<compile_context>
chip_gen: v5e
topology: v5e:2x2
jax: 0.10.0
libtpu: 0.0.40
codegen_flags: <defaults>
</compile_context>

<pallas_src>
import jax
import jax.numpy as jnp
from jax.experimental import pallas as pl
from jax.experimental.pallas import tpu as pltpu


def convex_mask_kernel(p_ref, w1_ref, b1_ref, w2_ref, b2_ref, out_ref):
    # p_ref  : (1, 9*Cin, PB)  im2col patches (channel-first, pixels on lanes)
    # w1_ref : (Cmid, 9*Cin)   3x3 conv weights, taps flattened into columns
    # b1_ref : (Cmid, 1)
    # w2_ref : (K, Cmid)       1x1 conv weights
    # b2_ref : (K, 1)
    # out_ref: (1, K, PB)      lane-dense output tile
    patches = p_ref[0]                                             # (9*Cin, PB)
    hidden = jnp.dot(w1_ref[...], patches,
                     preferred_element_type=jnp.float32) + b1_ref[...]
    hidden = jnp.maximum(hidden, 0.0)                              # bias + ReLU
    out = jnp.dot(w2_ref[...], hidden,
                  preferred_element_type=jnp.float32) + b2_ref[...]
    out_ref[0] = out.astype(out_ref.dtype)


def convex_mask_forward(x_nchw, params):
    """x_nchw: (N, C, H, W) float32.  params are PyTorch-shaped tensors."""
    w1, b1, w2, b2 = params   # (2*netC, netC, 3, 3), (2*netC,), (K, 2*netC, 1, 1), (K,)
    N, in_chs, H, W = x_nchw.shape

    # PKConv2d dynamic channel slicing (plain-JAX glue).
    out1 = 2 * in_chs
    w1s = w1[:out1, :in_chs]                  # (Cmid, Cin, 3, 3)
    b1s = b1[:out1]
    w2s = w2[:, :out1, 0, 0]                  # (K, Cmid)
    K = w2s.shape[0]
    C9 = 9 * in_chs
    HW = H * W

    # --- wrapper-side im2col (channel-first, tap-major / Cin-minor) --------
    x_pad = jnp.pad(x_nchw, ((0, 0), (0, 0), (1, 1), (1, 1)))
    patches = jnp.concatenate(
        [x_pad[:, :, dy:dy + H, dx:dx + W]
         for dy in range(3) for dx in range(3)],
        axis=1).reshape(N, C9, HW)            # (N, 9*Cin, H*W)

    # Weight layouts matching the tap-major patch channels.
    w1_k = jnp.transpose(w1s, (0, 2, 3, 1)).reshape(out1, C9)   # (Cmid, 9*Cin)
    b1_k = b1s.reshape(out1, 1)
    w2_k = w2s                                                   # (K, Cmid)
    b2_k = b2.reshape(K, 1)

    # --- pixel-axis tiling: lane-aligned blocks ----------------------------
    if HW >= 128:
        PB = 128 * min(8, HW // 128)          # up to 1024 pixels per block
    else:
        PB = HW                               # tiny images: one full block
    n_pb = pl.cdiv(HW, PB)

    # Explicit scoped-VMEM budget: 2x double-buffered (in + out) tiles,
    # weights/biases, plus headroom.  Well under every generation's limit.
    tile_bytes = 2 * 4 * (C9 * PB + K * PB) + 4 * (out1 * C9 + K * out1 + out1 + K)
    vmem_limit = max(tile_bytes + (2 << 20), 16 * 1024 * 1024)

    out_flat = pl.pallas_call(
        convex_mask_kernel,
        out_shape=jax.ShapeDtypeStruct((N, K, HW), x_nchw.dtype),
        grid=(N, n_pb),
        in_specs=[
            pl.BlockSpec((1, C9, PB), lambda n, s: (n, 0, s)),
            pl.BlockSpec((out1, C9), lambda n, s: (0, 0)),
            pl.BlockSpec((out1, 1), lambda n, s: (0, 0)),
            pl.BlockSpec((K, out1), lambda n, s: (0, 0)),
            pl.BlockSpec((K, 1), lambda n, s: (0, 0)),
        ],
        out_specs=pl.BlockSpec((1, K, PB), lambda n, s: (n, 0, s)),
        compiler_params=pltpu.CompilerParams(
            dimension_semantics=("parallel", "parallel"),
            vmem_limit_bytes=vmem_limit),
    )(patches, w1_k, b1_k, w2_k, b2_k)

    # Free (contiguous) reshape back to NCHW — no HBM transpose of the output.
    return out_flat.reshape(N, K, H, W)


def reference_forward(x, params):
    """Pure-JAX NCHW reference (mirrors the PyTorch module)."""
    w1, b1, w2, b2 = params
    in_chs = x.shape[1]
    out1 = 2 * in_chs
    y = jax.lax.conv_general_dilated(
        x, w1[:out1, :in_chs], (1, 1), ((1, 1), (1, 1)),
        dimension_numbers=("NCHW", "OIHW", "NCHW")) + b1[:out1][None, :, None, None]
    y = jnp.maximum(y, 0.0)
    z = jax.lax.conv_general_dilated(
        y, w2[:, :out1], (1, 1), ((0, 0), (0, 0)),
        dimension_numbers=("NCHW", "OIHW", "NCHW")) + b2[None, :, None, None]
    return z


if __name__ == "__main__":
    # Small synthetic config: net_chs=4, pred_stride=4 -> conv2 out = 4**2 * 9 = 144
    net_chs = 4
    pred_stride = 4
    N, H, W = 2, 16, 16
    K = pred_stride ** 2 * 9

    key = jax.random.PRNGKey(0)
    k_x, k_w1, k_b1, k_w2, k_b2 = jax.random.split(key, 5)

    x = jax.random.normal(k_x, (N, net_chs, H, W), dtype=jnp.float32)
    # Deterministic synthetic parameters (PyTorch weight shapes: OIHW).
    w1 = 0.1 * jax.random.normal(k_w1, (net_chs * 2, net_chs, 3, 3), dtype=jnp.float32)
    b1 = 0.1 * jax.random.normal(k_b1, (net_chs * 2,), dtype=jnp.float32)
    w2 = 0.1 * jax.random.normal(k_w2, (K, net_chs * 2, 1, 1), dtype=jnp.float32)
    b2 = 0.1 * jax.random.normal(k_b2, (K,), dtype=jnp.float32)
    params = (w1, b1, w2, b2)

    out = convex_mask_forward(x, params)
    out = jax.block_until_ready(out)

    ref = jax.block_until_ready(reference_forward(x, params))
    assert out.shape == (N, K, H, W), out.shape
    assert jnp.allclose(out, ref, rtol=1e-4, atol=1e-4), "mismatch vs reference"

    print("KERNEL_OK")
</pallas_src>

<mosaic_0001>
module attributes {stable_mosaic.version = 11 : i64} {
  func.func @convex_mask_kernel(%arg0: i32, %arg1: i32, %arg2: memref<1x36x256xf32, #tpu.memory_space<vmem>>, %arg3: memref<8x36xf32, #tpu.memory_space<vmem>>, %arg4: memref<8x1xf32, #tpu.memory_space<vmem>>, %arg5: memref<144x8xf32, #tpu.memory_space<vmem>>, %arg6: memref<144x1xf32, #tpu.memory_space<vmem>>, %arg7: memref<1x144x256xf32, #tpu.memory_space<vmem>>) attributes {dimension_semantics = [#tpu.dimension_semantics<parallel>, #tpu.dimension_semantics<parallel>], iteration_bounds = array<i64: 2, 1>, scalar_prefetch = 0 : i64, scratch_operands = 0 : i64, tpu.core_type = #tpu.core_type<tc>, window_params = [{transform_indices = @transform_0, window_bounds = array<i64: 1, 36, 256>}, {pipeline_mode = #tpu.pipeline_mode<synchronous>, transform_indices = @transform_1, window_bounds = array<i64: 8, 36>}, {pipeline_mode = #tpu.pipeline_mode<synchronous>, transform_indices = @transform_2, window_bounds = array<i64: 8, 1>}, {pipeline_mode = #tpu.pipeline_mode<synchronous>, transform_indices = @transform_3, window_bounds = array<i64: 144, 8>}, {pipeline_mode = #tpu.pipeline_mode<synchronous>, transform_indices = @transform_4, window_bounds = array<i64: 144, 1>}, {transform_indices = @transform_5, window_bounds = array<i64: 1, 144, 256>}]} {
    %c0 = arith.constant 0 : index
    %c0_0 = arith.constant 0 : index
    %c0_1 = arith.constant 0 : index
    %0 = vector.load %arg2[%c0, %c0_0, %c0_1] : memref<1x36x256xf32, #tpu.memory_space<vmem>>, vector<1x36x256xf32>
    %1 = vector.shape_cast %0 : vector<1x36x256xf32> to vector<36x256xf32>
    %c0_2 = arith.constant 0 : index
    %c0_3 = arith.constant 0 : index
    %2 = vector.load %arg3[%c0_2, %c0_3] : memref<8x36xf32, #tpu.memory_space<vmem>>, vector<8x36xf32>
    %cst = arith.constant dense<0.000000e+00> : vector<8x256xf32>
    %3 = tpu.matmul %2, %1, %cst {dimension_numbers = #tpu.dot_dimension_numbers<[1], [0], [0], [1], [0, 0, 1, 1], [], []>} : vector<8x36xf32>, vector<36x256xf32>, vector<8x256xf32> -> vector<8x256xf32>
    %c0_4 = arith.constant 0 : index
    %c0_5 = arith.constant 0 : index
    %4 = vector.load %arg4[%c0_4, %c0_5] : memref<8x1xf32, #tpu.memory_space<vmem>>, vector<8x1xf32>
    %5 = vector.broadcast %4 : vector<8x1xf32> to vector<8x256xf32>
    %6 = arith.addf %3, %5 : vector<8x256xf32>
    %cst_6 = arith.constant 0.000000e+00 : f32
    %7 = vector.broadcast %cst_6 : f32 to vector<8x256xf32>
    %8 = arith.maximumf %6, %7 : vector<8x256xf32>
    %c0_7 = arith.constant 0 : index
    %c0_8 = arith.constant 0 : index
    %9 = vector.load %arg5[%c0_7, %c0_8] : memref<144x8xf32, #tpu.memory_space<vmem>>, vector<144x8xf32>
    %cst_9 = arith.constant dense<0.000000e+00> : vector<144x256xf32>
    %10 = tpu.matmul %9, %8, %cst_9 {dimension_numbers = #tpu.dot_dimension_numbers<[1], [0], [0], [1], [0, 0, 1, 1], [], []>} : vector<144x8xf32>, vector<8x256xf32>, vector<144x256xf32> -> vector<144x256xf32>
    %c0_10 = arith.constant 0 : index
    %c0_11 = arith.constant 0 : index
    %11 = vector.load %arg6[%c0_10, %c0_11] : memref<144x1xf32, #tpu.memory_space<vmem>>, vector<144x1xf32>
    %12 = vector.broadcast %11 : vector<144x1xf32> to vector<144x256xf32>
    %13 = arith.addf %10, %12 : vector<144x256xf32>
    %c0_12 = arith.constant 0 : index
    %c0_13 = arith.constant 0 : index
    %c0_14 = arith.constant 0 : index
    %14 = vector.load %arg7[%c0_12, %c0_13, %c0_14] : memref<1x144x256xf32, #tpu.memory_space<vmem>>, vector<1x144x256xf32>
    %15 = vector.shape_cast %14 : vector<1x144x256xf32> to vector<144x256xf32>
    %16 = vector.shape_cast %13 : vector<144x256xf32> to vector<1x144x256xf32>
    tpu.vector_store %arg7[%c0_12, %c0_13, %c0_14], %16 {strides = array<i32>} : memref<1x144x256xf32, #tpu.memory_space<vmem>>, vector<1x144x256xf32>,
    return
  }
  func.func @transform_0(%arg0: i32, %arg1: i32) -> (i32, i32, i32) {
    %c0_i32 = arith.constant 0 : i32
    %c0_i32_0 = arith.constant 0 : i32
    return %arg0, %c0_i32, %arg1 : i32, i32, i32
  }
  func.func @transform_1(%arg0: i32, %arg1: i32) -> (i32, i32) {
    %c0_i32 = arith.constant 0 : i32
    %c0_i32_0 = arith.constant 0 : i32
    %c0_i32_1 = arith.constant 0 : i32
    return %c0_i32, %c0_i32_0 : i32, i32
  }
  func.func @transform_2(%arg0: i32, %arg1: i32) -> (i32, i32) {
    %c0_i32 = arith.constant 0 : i32
    %c0_i32_0 = arith.constant 0 : i32
    %c0_i32_1 = arith.constant 0 : i32
    return %c0_i32, %c0_i32_0 : i32, i32
  }
  func.func @transform_3(%arg0: i32, %arg1: i32) -> (i32, i32) {
    %c0_i32 = arith.constant 0 : i32
    %c0_i32_0 = arith.constant 0 : i32
    %c0_i32_1 = arith.constant 0 : i32
    return %c0_i32, %c0_i32_0 : i32, i32
  }
  func.func @transform_4(%arg0: i32, %arg1: i32) -> (i32, i32) {
    %c0_i32 = arith.constant 0 : i32
    %c0_i32_0 = arith.constant 0 : i32
    %c0_i32_1 = arith.constant 0 : i32
    return %c0_i32, %c0_i32_0 : i32, i32
  }
  func.func @transform_5(%arg0: i32, %arg1: i32) -> (i32, i32, i32) {
    %c0_i32 = arith.constant 0 : i32
    %c0_i32_0 = arith.constant 0 : i32
    return %arg0, %c0_i32, %arg1 : i32, i32, i32
  }
}

</mosaic_0001>

<bundles_post_ra>
// kernel: tpu_custom_call.1
= control target key start
LH: loop header
LB: loop body
LE: loop exit
PB: predicated region body
PF: predicated region fallthrough
CT: control target
= control target key end

     0   :  { %10 = vsyncpa [#allocation3], 0  ;;  %s1310_s0 = inlined_call_operand.vmem [shape: f32[2,36,256], index: 0, kind: input, shape index: {}]   ;;  %s1311_s1 = inlined_call_operand.vmem [shape: f32[8,36], index: 1, kind: input, shape index: {}]   ;;  %s1312_s2 = inlined_call_operand.vmem [shape: f32[8,1], index: 2, kind: input, shape index: {}]   ;;  %s1313_s3 = inlined_call_operand.vmem [shape: f32[144,8], index: 3, kind: input, shape index: {}]   ;;  %s1314_s4 = inlined_call_operand.vmem [shape: f32[144,1], index: 4, kind: input, shape index: {}]   ;;  %s1315_s5 = inlined_call_operand.hbm [shape: f32[2,144,256], index: 5, kind: output, shape index: {}]  }
   0x1   :  { %12 = vsyncpa [#allocation3 + $0x1], 0  ;;  %s1008_s18 = smov 0   ;;  %s1010_s19 = smov 0  }
   0x2   :  { %s1012_s20 = smov 0   ;;  %s1014_s21 = smov 0  }
   0x3   :  { %s1016_s22 = smov 0   ;;  %s1018_s23 = smov 0  }
   0x4 LB: > { %s780_s24 = sadd.s32 4294967295, %s973_s23   ;;  %s781_s25 = sadd.s32 4294967294, %s973_s23   ;;  %s973_s23 = sphi %s1018_s23, %s18_s23   ;;  %s969_s22 = sphi %s1016_s22, %s1322_s22   ;;  %s965_s21 = sphi %s1014_s21, %s1321_s21   ;;  %s961_s20 = sphi %s1012_s20, %s1320_s20   ;;  %s957_s19 = sphi %s1010_s19, %s1319_s19   ;;  %s953_s18 = sphi %s1008_s18, %s1318_s18  }
   0x5   : > { %s30_s26 = sadd.s32 1, %s969_s22  ;;  %s151_s27 = sadd.s32 1, %s961_s20 }
   0x6   : > { %p32_p0 = scmp.ge.s32.totalorder %s30_s26, 2  ;;  %p161_p1 = scmp.ne.s32.totalorder %s961_s20, %s957_s19 }
   0x7   : > { %p162_p2 = scmp.eq.s32.totalorder %s780_s24, 1  ;;  %p167_p3 = scmp.ne.s32.totalorder %s957_s19, %s953_s18 }
   0x8   : > { %s1324_s26 = smov (%p32_p0, %s30_s26), 0  ;;  %p168_p5 = scmp.eq.s32.totalorder %s781_s25, 1 }
   0x9   : > { %p1048_p4 = por %p162_p2, %p161_p1  ;;  %s146_s29 = ssub.s32 %s969_s22, %s1324_s26 }
   0xa   : > { %p784_p6 = scmp.ge.s32.totalorder %s973_s23, 1  ;;  %p149_p7 = scmp.eq.s32.totalorder %s146_s29, 0 }
   0xb   : > { %p1055_p8 = por %p168_p5, %p167_p3  ;;  %p211_p9 = scmp.lt.s32.totalorder %s973_s23, 3 }
   0xc   : > { %s1061_s6 = scalar_select %p149_p7, %s961_s20, %s151_s27  }
   0xd   : > { %p212_p10 = pnand %p784_p6, %p211_p9 }
   0xe   : > { %p244_p11 = scmp.lt.s32.totalorder (!%p212_p10), %s965_s21, 1  ;;  %s833_s16 = smul.u32 (!%p212_p10), 288, %s965_s21 }
   0xf   : > { %215 = sbr.rel (%p212_p10) target bundleno = 378 (0x17a), region = 40  ;;  %s915_s11 = scalar_lea.hbm (!%p212_p10), %s1315_s5, 576 }
  0x10   : > { %s697_s25 = scalar_lea.hbm (!%p212_p10), %s1315_s5, %s833_s16 }
  0x11   : > { %s700_s29 = sshll.u32 (!%p212_p10), %s697_s25, 4  ;;  %s701_s29 = int_to_ptr.hbm [resolvable:$true] %s700_s29 }
  0x12   : > { %s909_s7 = sshra.s32 (!%p212_p10), %s701_s29, 4  ;;  %s910_s7 = int_to_ptr.hbm [resolvable:$true] %s909_s7 }
  0x13   : > { %s911_s8 = scalar_lea.hbm (!%p212_p10), %s910_s7, 288  ;;  %p916_p1 = scmp.lt.s32.totalorder (!%p212_p10), %s910_s7, %s1315_s5 }
  0x14   : > { %v265_v0 = vld [vmem:[%s1312_s2] sm:$0xff]  ;;  %v975_v1 = vmov 0   ;;  %s245_s9 = scalar_select %p244_p11, %s965_s21, 1  ;;  %vm275_vm0 = vcmask 1043456   ;;  %vm271_vm1 = vcmask 293888   ;;  %v347_v14 = vld [vmem:[%s1314_s4 + $0x28] sm:$0xff] }
  0x15   : > { %892 = vset.pattern.permute.xlu0 %v975_v1  ;;  %893 = vset.pattern.permute.xlu1 %v975_v1  ;;  %v342_v2 = vld [vmem:[%s1314_s4] sm:$0xff]  ;;  %v353_v16 = vld [vmem:[%s1314_s4 + $0x58] sm:$0xff]  ;;  %v356_v17 = vld [vmem:[%s1314_s4 + $0x70] sm:$0xff]  ;;  %vm450_vm2 = vcmask 64512   ;;  %p912_p12 = scmp.ne.s32.totalorder %s910_s7, %s911_s8  ;;  %p917_p2 = scmp.lt.s32.totalorder %s915_s11, %s911_s8 }
  0x16   : > { %268 = vperm.xlu0 %892, %v265_v0   ;;  %894 = vset.pattern.permute.xlu2 %v975_v1  ;;  %s832_s10 = smul.u32 80, %s245_s9  ;;  %v264_v13 = vld [vmem:[%s1311_s1] sm:$0xff]  ;;  %v359_v18 = vld [vmem:[%s1314_s4 + $0x88] sm:$0xff]  ;;  %v344_v20 = vld [vmem:[%s1314_s4 + $0x10] sm:$0xff] }
  0x17   : > { %v350_v15 = vld [vmem:[%s1314_s4 + $0x40] sm:$0xff]  ;;  %v343_v19 = vld [vmem:[%s1314_s4 + $0x8] sm:$0xff]  ;;  %v348_v21 = vld [vmem:[%s1314_s4 + $0x30] sm:$0xff]  ;;  %p913_p13 = pnand %p912_p12, %p1048_p4  ;;  %p918_p3 = por %p917_p2, %p916_p1 }
  0x18   : > { %s251_s13 = scalar_lea.vmem %s1310_s0, %s832_s10  ;;  %367 = vperm.xlu1 %893, %v343_v19   ;;  %v351_v24 = vld [vmem:[%s1314_s4 + $0x48] sm:$0xff]  ;;  %v324_v30 = vld [vmem:[%s1313_s3] sm:$0xff]  ;;  %v345_v32 = vld [vmem:[%s1314_s4 + $0x18] sm:$0xff] }
  0x19   : > { %v262_v3 = vld [vmem:[%s251_s13 + $0x40] sm:$0xf]  ;;  %v263_v4 = vld [vmem:[%s251_s13 + $0x48] sm:$0xf]  ;;  %v260_v5 = vld [vmem:[%s251_s13 + $0x30] sm:$0xff]  ;;  %377 = vperm.xlu2 %894, %v345_v32   ;;  %p914_p0 = pneg %p913_p13 }
  0x1a   : > { %786 = vmatpush.msk.msra.mxu0 %vm275_vm0, %v262_v3  ;;  %788 = vmatpush.msk.msra.mxu1 %vm275_vm0, %v263_v4  ;;  %v261_v6 = vld [vmem:[%s251_s13 + $0x38] sm:$0xff]  ;;  %v258_v7 = vld [vmem:[%s251_s13 + $0x20] sm:$0xff]  ;;  %v259_v8 = vld [vmem:[%s251_s13 + $0x28] sm:$0xff] }
  0x1b   : > { %v256_v9 = vld [vmem:[%s251_s13 + $0x10] sm:$0xff]  ;;  %v257_v10 = vld [vmem:[%s251_s13 + $0x18] sm:$0xff]  ;;  %v254_v11 = vld [vmem:[%s251_s13] sm:$0xff]  ;;  %p919_p5 = pnand %p918_p3, %p914_p0 }
  0x1c   : > { %294 = vmatpush.msra.mxu0 %v260_v5  ;;  %314 = vmatpush.msra.mxu1 %v261_v6  ;;  %v255_v12 = vld [vmem:[%s251_s13 + $0x8] sm:$0xff]  ;;  %v332_v31 = vld [vmem:[%s1313_s3 + $0x40] sm:$0xff]  ;;  %v326_v37 = vld [vmem:[%s1313_s3 + $0x10] sm:$0xff]  ;;  %s240_s13 = sand.u32 1, %s957_s19  }
  0x1d   : > { %v325_v33 = vld [vmem:[%s1313_s3 + $0x8] sm:$0xff]  ;;  %v346_v35 = vld [vmem:[%s1314_s4 + $0x20] sm:$0xff]  ;;  %v334_v38 = vld [vmem:[%s1313_s3 + $0x50] sm:$0xff]  ;;  %s831_s14 = smul.u32 288, %s240_s13  ;;  %s684_s21 = scalar_lea.sflag [#allocation3], %s240_s13 }
  0x1e   : > { %362 = vperm.xlu0 %892, %v342_v2   ;;  %295 = vmatpush.msra.mxu0 %v258_v7  ;;  %v333_v34 = vld [vmem:[%s1313_s3 + $0x48] sm:$0xff]  ;;  %v354_v36 = vld [vmem:[%s1314_s4 + $0x60] sm:$0xff]  ;;  %v349_v39 = vld [vmem:[%s1314_s4 + $0x38] sm:$0xff] }
  0x1f   : > { %315 = vmatpush.msra.mxu1 %v259_v8  ;;  %v357_v40 = vld [vmem:[%s1314_s4 + $0x78] sm:$0xff]  ;;  %v352_v43 = vld [vmem:[%s1314_s4 + $0x50] sm:$0xff]  ;;  %v328_v44 = vld [vmem:[%s1313_s3 + $0x20] sm:$0xff]  ;;  %s1225_s15 = scalar_lea.vmem [#allocation2], %s831_s14 }
  0x20   : > { %296 = vmatpush.msra.mxu0 %v256_v9  ;;  %372 = vperm.xlu1 %893, %v344_v20   ;;  %v327_v41 = vld [vmem:[%s1313_s3 + $0x18] sm:$0xff]  ;;  %v336_v45 = vld [vmem:[%s1313_s3 + $0x60] sm:$0xff]  ;;  %v355_v46 = vld [vmem:[%s1314_s4 + $0x68] sm:$0xff]  ;;  %s698_s27 = sshll.u32 %s1225_s15, 4  ;;  %s699_s27 = int_to_ptr.vmem [resolvable:$true] %s698_s27 }
  0x21   : > { %316 = vmatpush.msra.mxu1 %v257_v10  ;;  %382 = vperm.xlu2 %894, %v346_v35   ;;  %v335_v42 = vld [vmem:[%s1313_s3 + $0x58] sm:$0xff]  ;;  %v329_v47 = vld [vmem:[%s1313_s3 + $0x28] sm:$0xff]  ;;  %v358_v49 = vld [vmem:[%s1314_s4 + $0x80] sm:$0xff] }
  0x22   : > { %297 = vmatpush.msra.mxu0 %v254_v11  ;;  %v337_v48 = vld [vmem:[%s1313_s3 + $0x68] sm:$0xff]  ;;  %v330_v50 = vld [vmem:[%s1313_s3 + $0x30] sm:$0xff]  ;;  %v331_v52 = vld [vmem:[%s1313_s3 + $0x38] sm:$0xff] }
  0x23   : > { %317 = vmatpush.msra.mxu1 %v255_v12  ;;  %787 = vmatmul.msk.f32.vlgmr.msra.gmra.mxu0 %vm271_vm1, %v264_v13  ;;  %v338_v51 = vld [vmem:[%s1313_s3 + $0x70] sm:$0xff]  ;;  %v339_v53 = vld [vmem:[%s1313_s3 + $0x78] sm:$0xff]  ;;  %v340_v54 = vld [vmem:[%s1313_s3 + $0x80] sm:$0xff] }
  0x24   : > { %789 = vmatmul.msk.f32.vlgmr.msra.gmra.mxu1 %vm271_vm1, %v264_v13  ;;  %v341_v55 = vld [vmem:[%s1313_s3 + $0x88] sm:$0xff] }
  0x26   : > { %387 = vperm.xlu0 %892, %v347_v14  }
  0x28   : > { %392 = vperm.xlu1 %893, %v348_v21  }
  0x29   : > { %397 = vperm.xlu2 %894, %v349_v39  }
  0x2e   : > { %402 = vperm.xlu0 %892, %v350_v15  }
  0x30   : > { %407 = vperm.xlu1 %893, %v351_v24  }
  0x31   : > { %412 = vperm.xlu2 %894, %v352_v43  }
  0x36   : > { %417 = vperm.xlu0 %892, %v353_v16  }
  0x38   : > { %422 = vperm.xlu1 %893, %v354_v36  }
  0x39   : > { %427 = vperm.xlu2 %894, %v355_v46  }
  0x3e   : > { %432 = vperm.xlu0 %892, %v356_v17  }
  0x40   : > { %437 = vperm.xlu1 %893, %v357_v40  }
  0x41   : > { %442 = vperm.xlu2 %894, %v358_v49  }
  0x46   : > { %447 = vperm.xlu0 %892, %v359_v18  }
  0x73   : > { %v378_v58 = vpop.permute.xlu2 %377 }
  0x7b   : > { %v383_v62 = vpop.permute.xlu2 %382 }
  0x83   : > { %v1231_v12 = vpop.permute.xlu2 %397 }
  0x88   : > { %v269_v22 = vpop.permute.xlu0 %268 }
  0x8a   : > { %v368_v56 = vpop.permute.xlu1 %367 }
  0x90   : > { %v363_v57 = vpop.permute.xlu0 %362 }
  0x92   : > { %v373_v59 = vpop.permute.xlu1 %372 }
  0x98   : > { %v1219_v60 = vpop.permute.xlu0 %387 }
  0x9a   : > { %v1223_v2 = vpop.permute.xlu1 %392 }
  0xa0   : > { %v299_v23 = vpop.f32.mrf.mxu0  ;;  %v403_v3 = vpop.permute.xlu0 %402 }
  0xa1   : > { %v300_v25 = vadd.f32 %v299_v23, %v269_v22  ;;  %v319_v26 = vpop.f32.mrf.mxu1 }
  0xa2   : > { %v320_v27 = vadd.f32 %v319_v26, %v269_v22  ;;  %v408_v13 = vpop.permute.xlu1 %407  ;;  %v413_v22 = vpop.permute.xlu2 %412 }
  0xa3   : > { %v322_v28 = vmax.f32 %v300_v25, 0.0 }
  0xa4   : > { %v323_v29 = vmax.f32 %v320_v27, 0.0 }
  0xa5   : > { %520 = vmatpush.msrb.mxu0 %v322_v28  ;;  %829 = vmatpush.msra.mxu2 %v322_v28 }
  0xa6   : > { %591 = vmatpush.msrb.mxu1 %v323_v29  ;;  %830 = vmatpush.msra.mxu3 %v323_v29 }
  0xa7   : > { %790 = vmatmul.msk.f32.vlgmr.msrb.gmra.mxu0 %vm450_vm2, %v324_v30  ;;  %798 = vmatmul.msk.f32.vlgmr.msra.gmra.mxu2 %vm450_vm2, %v332_v31 }
  0xa8   : > { %808 = vmatmul.msk.f32.vlgmr.msrb.gmra.mxu1 %vm450_vm2, %v324_v30  ;;  %816 = vmatmul.msk.f32.vlgmr.msra.gmra.mxu3 %vm450_vm2, %v332_v31  ;;  %v418_v31 = vpop.permute.xlu0 %417 }
  0xaa   : > { %v423_v40 = vpop.permute.xlu1 %422  ;;  %v428_v49 = vpop.permute.xlu2 %427 }
  0xaf   : > { %791 = vmatmul.msk.f32.gmra.mxu0 %vm450_vm2, %v325_v33  ;;  %799 = vmatmul.msk.f32.gmra.mxu2 %vm450_vm2, %v333_v34 }
  0xb0   : > { %809 = vmatmul.msk.f32.gmra.mxu1 %vm450_vm2, %v325_v33  ;;  %817 = vmatmul.msk.f32.gmra.mxu3 %vm450_vm2, %v333_v34 }
  0xb7   : > { %792 = vmatmul.msk.f32.gmra.mxu0 %vm450_vm2, %v326_v37  ;;  %800 = vmatmul.msk.f32.gmra.mxu2 %vm450_vm2, %v334_v38 }
  0xb8   : > { %810 = vmatmul.msk.f32.gmra.mxu1 %vm450_vm2, %v326_v37  ;;  %818 = vmatmul.msk.f32.gmra.mxu3 %vm450_vm2, %v334_v38 }
  0xbf   : > { %793 = vmatmul.msk.f32.gmra.mxu0 %vm450_vm2, %v327_v41  ;;  %801 = vmatmul.msk.f32.gmra.mxu2 %vm450_vm2, %v335_v42 }
  0xc0   : > { %811 = vmatmul.msk.f32.gmra.mxu1 %vm450_vm2, %v327_v41  ;;  %819 = vmatmul.msk.f32.gmra.mxu3 %vm450_vm2, %v335_v42 }
  0xc7   : > { %794 = vmatmul.msk.f32.gmra.mxu0 %vm450_vm2, %v328_v44  ;;  %802 = vmatmul.msk.f32.gmra.mxu2 %vm450_vm2, %v336_v45 }
  0xc8   : > { %812 = vmatmul.msk.f32.gmra.mxu1 %vm450_vm2, %v328_v44  ;;  %820 = vmatmul.msk.f32.gmra.mxu3 %vm450_vm2, %v336_v45 }
  0xcf   : > { %795 = vmatmul.msk.f32.gmra.mxu0 %vm450_vm2, %v329_v47  ;;  %803 = vmatmul.msk.f32.gmra.mxu2 %vm450_vm2, %v337_v48 }
  0xd0   : > { %813 = vmatmul.msk.f32.gmra.mxu1 %vm450_vm2, %v329_v47  ;;  %821 = vmatmul.msk.f32.gmra.mxu3 %vm450_vm2, %v337_v48 }
  0xd7   : > { %796 = vmatmul.msk.f32.gmra.mxu0 %vm450_vm2, %v330_v50  ;;  %804 = vmatmul.msk.f32.gmra.mxu2 %vm450_vm2, %v338_v51 }
  0xd8   : > { %814 = vmatmul.msk.f32.gmra.mxu1 %vm450_vm2, %v330_v50  ;;  %822 = vmatmul.msk.f32.gmra.mxu3 %vm450_vm2, %v338_v51 }
  0xdf   : > { %797 = vmatmul.msk.f32.gmra.mxu0 %vm450_vm2, %v331_v52  ;;  %805 = vmatmul.msk.f32.gmra.mxu2 %vm450_vm2, %v339_v53 }
  0xe0   : > { %815 = vmatmul.msk.f32.gmra.mxu1 %vm450_vm2, %v331_v52  ;;  %823 = vmatmul.msk.f32.gmra.mxu3 %vm450_vm2, %v339_v53 }
  0xe7   : > { %806 = vmatmul.msk.f32.gmra.mxu2 %vm450_vm2, %v340_v54 }
  0xe8   : > { %824 = vmatmul.msk.f32.gmra.mxu3 %vm450_vm2, %v340_v54 }
  0xef   : > { %807 = vmatmul.msk.f32.gmra.mxu2 %vm450_vm2, %v341_v55 }
  0xf0   : > { %825 = vmatmul.msk.f32.gmra.mxu3 %vm450_vm2, %v341_v55 }
 0x124   : > { %v522_v61 = vpop.f32.mrf.mxu0 }
 0x125   : > { %v523_v63 = vadd.f32 %v522_v61, %v363_v57  ;;  %v593_v0 = vpop.f32.mrf.mxu1 }
 0x126   : > { %v594_v1 = vadd.f32 %v593_v0, %v363_v57 }
 0x127   : > { %647 = vst [vmem:[%s1225_s15] sm:$0xff] %v523_v63 }
 0x128   : > { %648 = vst [vmem:[%s1225_s15 + $0x8] sm:$0xff] %v594_v1 }
 0x12a   : > { %v546_v4 = vpop.f32.mrf.mxu2 }
 0x12b   : > { %v547_v5 = vadd.f32 %v546_v4, %v403_v3  ;;  %v617_v6 = vpop.f32.mrf.mxu3 }
 0x12c   : > { %v618_v7 = vadd.f32 %v617_v6, %v403_v3  ;;  %v525_v8 = vpop.f32.mrf.mxu0 }
 0x12d   : > { %663 = vst [vmem:[%s1225_s15 + $0x80] sm:$0xff] %v547_v5  ;;  %v526_v9 = vadd.f32 %v525_v8, %v368_v56  ;;  %v596_v10 = vpop.f32.mrf.mxu1  ;;  %v443_v8 = vpop.permute.xlu2 %442 }
 0x12e   : > { %664 = vst [vmem:[%s1225_s15 + $0x88] sm:$0xff] %v618_v7  ;;  %v597_v11 = vadd.f32 %v596_v10, %v368_v56 }
 0x12f   : > { %649 = vst [vmem:[%s1225_s15 + $0x10] sm:$0xff] %v526_v9 }
 0x130   : > { %650 = vst [vmem:[%s1225_s15 + $0x18] sm:$0xff] %v597_v11 }
 0x132   : > { %v549_v14 = vpop.f32.mrf.mxu2 }
 0x133   : > { %v550_v15 = vadd.f32 %v549_v14, %v408_v13  ;;  %v620_v16 = vpop.f32.mrf.mxu3 }
 0x134   : > { %v621_v17 = vadd.f32 %v620_v16, %v408_v13  ;;  %v528_v18 = vpop.f32.mrf.mxu0 }
 0x135   : > { %665 = vst [vmem:[%s1225_s15 + $0x90] sm:$0xff] %v550_v15  ;;  %v529_v19 = vadd.f32 %v528_v18, %v373_v59  ;;  %v599_v20 = vpop.f32.mrf.mxu1 }
 0x136   : > { %666 = vst [vmem:[%s1225_s15 + $0x98] sm:$0xff] %v621_v17  ;;  %v600_v21 = vadd.f32 %v599_v20, %v373_v59 }
 0x137   : > { %651 = vst [vmem:[%s1225_s15 + $0x20] sm:$0xff] %v529_v19 }
 0x138   : > { %652 = vst [vmem:[%s1225_s15 + $0x28] sm:$0xff] %v600_v21 }
 0x13a   : > { %v552_v23 = vpop.f32.mrf.mxu2 }
 0x13b   : > { %v553_v24 = vadd.f32 %v552_v23, %v413_v22  ;;  %v623_v25 = vpop.f32.mrf.mxu3 }
 0x13c   : > { %v624_v26 = vadd.f32 %v623_v25, %v413_v22  ;;  %v531_v27 = vpop.f32.mrf.mxu0 }
 0x13d   : > { %667 = vst [vmem:[%s1225_s15 + $0xa0] sm:$0xff] %v553_v24  ;;  %v532_v28 = vadd.f32 %v531_v27, %v378_v58  ;;  %v602_v29 = vpop.f32.mrf.mxu1 }
 0x13e   : > { %668 = vst [vmem:[%s1225_s15 + $0xa8] sm:$0xff] %v624_v26  ;;  %v603_v30 = vadd.f32 %v602_v29, %v378_v58  ;;  %v433_v58 = vpop.permute.xlu0 %432 }
 0x13f   : > { %653 = vst [vmem:[%s1225_s15 + $0x30] sm:$0xff] %v532_v28 }
 0x140   : > { %654 = vst [vmem:[%s1225_s15 + $0x38] sm:$0xff] %v603_v30 }
 0x142   : > { %v555_v32 = vpop.f32.mrf.mxu2 }
 0x143   : > { %v556_v33 = vadd.f32 %v555_v32, %v418_v31  ;;  %v626_v34 = vpop.f32.mrf.mxu3 }
 0x144   : > { %v627_v35 = vadd.f32 %v626_v34, %v418_v31  ;;  %v534_v36 = vpop.f32.mrf.mxu0 }
 0x145   : > { %669 = vst [vmem:[%s1225_s15 + $0xb0] sm:$0xff] %v556_v33  ;;  %v535_v37 = vadd.f32 %v534_v36, %v383_v62  ;;  %v605_v38 = vpop.f32.mrf.mxu1 }
 0x146   : > { %670 = vst [vmem:[%s1225_s15 + $0xb8] sm:$0xff] %v627_v35  ;;  %v606_v39 = vadd.f32 %v605_v38, %v383_v62  ;;  %v448_v13 = vpop.permute.xlu0 %447 }
 0x147   : > { %655 = vst [vmem:[%s1225_s15 + $0x40] sm:$0xff] %v535_v37 }
 0x148   : > { %656 = vst [vmem:[%s1225_s15 + $0x48] sm:$0xff] %v606_v39 }
 0x14a   : > { %v558_v41 = vpop.f32.mrf.mxu2 }
 0x14b   : > { %v559_v42 = vadd.f32 %v558_v41, %v423_v40  ;;  %v629_v43 = vpop.f32.mrf.mxu3 }
 0x14c   : > { %v630_v44 = vadd.f32 %v629_v43, %v423_v40  ;;  %v537_v45 = vpop.f32.mrf.mxu0 }
 0x14d   : > { %671 = vst [vmem:[%s1225_s15 + $0xc0] sm:$0xff] %v559_v42  ;;  %v538_v46 = vadd.f32 %v537_v45, %v1219_v60  ;;  %v608_v47 = vpop.f32.mrf.mxu1 }
 0x14e   : > { %672 = vst [vmem:[%s1225_s15 + $0xc8] sm:$0xff] %v630_v44  ;;  %v609_v48 = vadd.f32 %v608_v47, %v1219_v60 }
 0x14f   : > { %657 = vst [vmem:[%s1225_s15 + $0x50] sm:$0xff] %v538_v46 }
 0x150   : > { %658 = vst [vmem:[%s1225_s15 + $0x58] sm:$0xff] %v609_v48 }
 0x152   : > { %v561_v50 = vpop.f32.mrf.mxu2 }
 0x153   : > { %v562_v51 = vadd.f32 %v561_v50, %v428_v49  ;;  %v632_v52 = vpop.f32.mrf.mxu3 }
 0x154   : > { %v633_v53 = vadd.f32 %v632_v52, %v428_v49  ;;  %v540_v54 = vpop.f32.mrf.mxu0 }
 0x155   : > { %673 = vst [vmem:[%s1225_s15 + $0xd0] sm:$0xff] %v562_v51  ;;  %v541_v55 = vadd.f32 %v540_v54, %v1223_v2  ;;  %v611_v56 = vpop.f32.mrf.mxu1 }
 0x156   : > { %674 = vst [vmem:[%s1225_s15 + $0xd8] sm:$0xff] %v633_v53  ;;  %v612_v57 = vadd.f32 %v611_v56, %v1223_v2  ;;  %v438_v2 = vpop.permute.xlu1 %437 }
 0x157   : > { %659 = vst [vmem:[%s1225_s15 + $0x60] sm:$0xff] %v541_v55 }
 0x158   : > { %660 = vst [vmem:[%s1225_s15 + $0x68] sm:$0xff] %v612_v57 }
 0x15a   : > { %v564_v59 = vpop.f32.mrf.mxu2 }
 0x15b   : > { %v565_v60 = vadd.f32 %v564_v59, %v433_v58  ;;  %v635_v61 = vpop.f32.mrf.mxu3 }
 0x15c   : > { %v636_v62 = vadd.f32 %v635_v61, %v433_v58  ;;  %v543_v63 = vpop.f32.mrf.mxu0 }
 0x15d   : > { %675 = vst [vmem:[%s1225_s15 + $0xe0] sm:$0xff] %v565_v60  ;;  %v544_v0 = vadd.f32 %v543_v63, %v1231_v12  ;;  %v614_v1 = vpop.f32.mrf.mxu1 }
 0x15e   : > { %676 = vst [vmem:[%s1225_s15 + $0xe8] sm:$0xff] %v636_v62  ;;  %v615_v3 = vadd.f32 %v614_v1, %v1231_v12 }
 0x15f   : > { %661 = vst [vmem:[%s1225_s15 + $0x70] sm:$0xff] %v544_v0 }
 0x160   : > { %662 = vst [vmem:[%s1225_s15 + $0x78] sm:$0xff] %v615_v3 }
 0x162   : > { %v567_v4 = vpop.f32.mrf.mxu2 }
 0x163   : > { %v568_v5 = vadd.f32 %v567_v4, %v438_v2  ;;  %v638_v6 = vpop.f32.mrf.mxu3 }
 0x164   : > { %v639_v7 = vadd.f32 %v638_v6, %v438_v2 }
 0x165   : > { %677 = vst [vmem:[%s1225_s15 + $0xf0] sm:$0xff] %v568_v5 }
 0x166   : > { %678 = vst [vmem:[%s1225_s15 + $0xf8] sm:$0xff] %v639_v7 }
 0x16a   : > { %v570_v9 = vpop.f32.mrf.mxu2 }
 0x16b   : > { %v571_v10 = vadd.f32 %v570_v9, %v443_v8  ;;  %v641_v11 = vpop.f32.mrf.mxu3 }
 0x16c   : > { %v642_v12 = vadd.f32 %v641_v11, %v443_v8 }
 0x16d   : > { %679 = vst [vmem:[%s1225_s15 + $0x100] sm:$0xff] %v571_v10 }
 0x16e   : > { %680 = vst [vmem:[%s1225_s15 + $0x108] sm:$0xff] %v642_v12 }
 0x172   : > { %v573_v14 = vpop.f32.mrf.mxu2 }
 0x173   : > { %v574_v15 = vadd.f32 %v573_v14, %v448_v13  ;;  %v644_v16 = vpop.f32.mrf.mxu3 }
 0x174   : > { %v645_v17 = vadd.f32 %v644_v16, %v448_v13 }
 0x175   : > { %681 = vst [vmem:[%s1225_s15 + $0x110] sm:$0xff] %v574_v15 }
 0x176   : > { %682 = vst [vmem:[%s1225_s15 + $0x118] sm:$0xff] %v645_v17 }
 0x177   : > { %922 = shalt.err (!%p919_p5)
}
 0x178   : > { %s976_s13 = smov 256   ;;  %s977_s15 = smov 16  }
 0x179   : > { %834 = dma.vmem_to_hbm [thread:$0]  (%p1048_p4), %s699_s27, 4608, %s701_s29, %s684_s21, %s976_s13, %s976_s13, %s977_s15  }
 0x17a PF: > { %p840_p6 = scmp.ge.s32.totalorder %s973_s23, 2  ;;  %s715_s16 = sand.u32 1, %s953_s18  }
 0x17b   : > { %s716_s17 = scalar_lea.sflag [#allocation3], %s715_s16 }
 0x17c   : > { %p837_p7 = pnand %p840_p6, %p1055_p8 }
 0x17e   : > { %p838_p9 = pneg %p837_p7 }
 0x180   : > { %948 = dma.done.wait (%p838_p9), %s716_s17, 4608  }
 0x181   : > { %950 = vsyncadd (%p838_p9), %s716_s17, 4294962688  ;;  %s18_s23 = sadd.s32 1, %s973_s23   ;;  %s1318_s18 = smov %s957_s19 }
 0x182   : > { %p15_p10 = scmp.ge.s32.totalorder %s18_s23, 4   ;;  %s1319_s19 = smov %s961_s20 }
 0x183   : > { %s1320_s20 = smov %s1061_s6  ;;  %s1321_s21 = smov %s969_s22 }
 0x184   : > { %s1322_s22 = smov %s1324_s26  ;;  %17 = sbr.rel (!%p15_p10) target bundleno = 4 (0x4), region = 75 }
 0x189   :  { %722 = vsyncpa [#allocation3], 1 }
 0x18a   :  { %724 = vsyncpa [#allocation3 + $0x1], 1 }

</bundles_post_ra>
